<compile_context>
chip_gen: v7x
topology: tpu7x:2x2x1
jax: 0.10.0
libtpu: 0.0.40
codegen_flags: <defaults>
</compile_context>

<pallas_src>
import functools

import jax
import jax.numpy as jnp
from jax import lax
from jax.experimental import pallas as pl
from jax.experimental.pallas import tpu as pltpu


def _model_emo_kernel(x_ref, w1_ref, b1_ref, w2_ref, b2_ref, wn_ref, o_ref,
                      *, negative_slope, ln_eps):
    """Single fused forward pass for the whole batch (one grid step)."""
    x = x_ref[...]                                                  # (B, Di1*Di2)

    # (fused conv1x1 + fc1) + LeakyReLU
    h1 = jnp.dot(x, w1_ref[...], preferred_element_type=jnp.float32) + b1_ref[...]
    h1 = jnp.where(h1 >= 0.0, h1, negative_slope * h1)

    # fc2 + LeakyReLU
    h2 = jnp.dot(h1, w2_ref[...], preferred_element_type=jnp.float32) + b2_ref[...]
    h2 = jnp.where(h2 >= 0.0, h2, negative_slope * h2)

    # LayerNorm (no affine, biased variance, eps inside the sqrt)
    mean = jnp.mean(h2, axis=-1, keepdims=True)
    cen = h2 - mean
    var = jnp.mean(cen * cen, axis=-1, keepdims=True)
    ln = cen * lax.rsqrt(var + ln_eps)

    # projection onto L2-normalized class weights, then softmax over classes
    logits = jnp.dot(ln, wn_ref[...], preferred_element_type=jnp.float32)
    logits = logits - jnp.max(logits, axis=-1, keepdims=True)
    e = jnp.exp(logits)
    o_ref[...] = (e / jnp.sum(e, axis=-1, keepdims=True)).astype(o_ref.dtype)


def model_emo_forward(x, prep, *, num_classes):
    """x: (B, Di1, Di2) -> (B, num_classes).  Matches the PyTorch forward."""
    B, Di1, Di2 = x.shape
    K = Di1 * Di2
    Fc1 = prep["w1f_t"].shape[1]
    Fc2 = prep["w2_t"].shape[1]

    # Row-major flatten of x — free wrapper-side reshape; matches the fused
    # weight layout (index i*Di2 + c).
    x2 = x.reshape(B, K)

    kernel = functools.partial(_model_emo_kernel,
                               negative_slope=0.2, ln_eps=1e-5)

    full2d = lambda i: (0, 0)   # every operand is a single whole-array block

    out = pl.pallas_call(
        kernel,
        out_shape=jax.ShapeDtypeStruct((B, num_classes), x.dtype),
        grid_spec=pltpu.PrefetchScalarGridSpec(
            num_scalar_prefetch=0,
            grid=(1,),
            in_specs=[
                pl.BlockSpec((B, K), full2d),               # x (flattened)
                pl.BlockSpec((K, Fc1), full2d),             # fused conv+fc1 weight^T
                pl.BlockSpec((1, Fc1), full2d),             # fused bias
                pl.BlockSpec((Fc1, Fc2), full2d),           # fc2 weight^T
                pl.BlockSpec((1, Fc2), full2d),             # fc2 bias
                pl.BlockSpec((Fc2, num_classes), full2d),   # normalized W^T
            ],
            out_specs=pl.BlockSpec((B, num_classes), full2d),
        ),
        compiler_params=pltpu.CompilerParams(
            dimension_semantics=("arbitrary",)),
    )(x2, prep["w1f_t"], prep["b1f"], prep["w2_t"], prep["b2"], prep["wn_t"])

    return out


def _init_params(key, *, num_classes, Di1, Di2, Drc, Fc1, Fc2):
    """Deterministic PyTorch-style init (uniform +-1/sqrt(fan_in))."""
    ks = jax.random.split(key, 7)

    def u(k, shape, bound):
        return jax.random.uniform(k, shape, jnp.float32, -bound, bound)

    return {
        "wc": u(ks[0], (Drc, Di2), 1.0 / (Di2 ** 0.5)),        # Conv1d weight (k=1 squeezed)
        "bc": u(ks[1], (Drc,), 1.0 / (Di2 ** 0.5)),            # Conv1d bias
        "w1": u(ks[2], (Fc1, Drc * Di1), 1.0 / ((Drc * Di1) ** 0.5)),
        "b1": u(ks[3], (Fc1,), 1.0 / ((Drc * Di1) ** 0.5)),
        "w2": u(ks[4], (Fc2, Fc1), 1.0 / (Fc1 ** 0.5)),
        "b2": u(ks[5], (Fc2,), 1.0 / (Fc1 ** 0.5)),
        "W":  u(ks[6], (num_classes, Fc2), 0.25),
    }


def _prepare(params, *, Di1, Di2, Drc):
    """Parameter-only transforms: fuse conv1x1 into fc1, normalize W, transpose."""
    Fc1 = params["w1"].shape[0]
    Fc2 = params["w2"].shape[0]

    # fc1 weight viewed over the PyTorch flatten order (channel-major): [f, o, i]
    w1r = params["w1"].reshape(Fc1, Drc, Di1)
    # A[f, i, c] = sum_o w1[f, o*Di1+i] * wc[o, c]
    a = jnp.einsum("foi,oc->fic", w1r, params["wc"])
    w1f_t = a.transpose(1, 2, 0).reshape(Di1 * Di2, Fc1)       # [(i*Di2+c), f]
    b1f = params["b1"] + jnp.einsum("foi,o->f", w1r, params["bc"])

    # F.normalize(W): each class row divided by its L2 norm (clamped at 1e-12)
    wn = params["W"] / jnp.maximum(
        jnp.linalg.norm(params["W"], axis=1, keepdims=True), 1e-12)

    return {
        "w1f_t": w1f_t,
        "b1f": b1f.reshape(1, Fc1),
        "w2_t": params["w2"].T,
        "b2": params["b2"].reshape(1, Fc2),
        "wn_t": wn.T,
    }


def _reference(x, params):
    """Pure-JAX transcription of the PyTorch forward (for validation)."""
    leaky = lambda v: jnp.where(v >= 0.0, v, 0.2 * v)
    xt = jnp.swapaxes(x, 1, 2)                                  # (B, Di2, Di1)
    y = (jnp.einsum("oc,bci->boi", params["wc"], xt)
         + params["bc"][None, :, None])                        # (B, Drc, Di1)
    z = y.reshape(x.shape[0], -1)                               # (B, Drc*Di1)
    h1 = leaky(z @ params["w1"].T + params["b1"])
    h2 = leaky(h1 @ params["w2"].T + params["b2"])
    mean = h2.mean(-1, keepdims=True)
    var = ((h2 - mean) ** 2).mean(-1, keepdims=True)
    ln = (h2 - mean) / jnp.sqrt(var + 1e-5)
    wn = params["W"] / jnp.maximum(
        jnp.linalg.norm(params["W"], axis=1, keepdims=True), 1e-12)
    logits = ln @ wn.T
    return jax.nn.softmax(logits, axis=1)


if __name__ == "__main__":
    num_classes, Di1, Di2, Drc, Fc1, Fc2 = 4, 16, 32, 32, 64, 64
    batch = 2

    key = jax.random.PRNGKey(0)
    k_x, k_p = jax.random.split(key)
    # Module expects x of shape (batch, Di1, Di2): transpose(2,1) feeds Di2
    # channels into the Conv1d.
    x = jax.random.normal(k_x, (batch, Di1, Di2), jnp.float32)
    params = _init_params(k_p, num_classes=num_classes, Di1=Di1, Di2=Di2,
                          Drc=Drc, Fc1=Fc1, Fc2=Fc2)
    prep = _prepare(params, Di1=Di1, Di2=Di2, Drc=Drc)

    out = model_emo_forward(x, prep, num_classes=num_classes)
    out = jax.block_until_ready(out)

    ref = _reference(x, params)
    assert out.shape == (batch, num_classes)
    assert jnp.allclose(out, ref, atol=1e-4, rtol=1e-4), (
        float(jnp.max(jnp.abs(out - ref))))
    assert jnp.allclose(jnp.sum(out, axis=1), 1.0, atol=1e-5)

    print("KERNEL_OK")
</pallas_src>

<mosaic_0001>
module attributes {stable_mosaic.version = 11 : i64} {
  func.func @_model_emo_kernel(%arg0: i32, %arg1: memref<2x512xf32, #tpu.memory_space<vmem>>, %arg2: memref<512x64xf32, #tpu.memory_space<vmem>>, %arg3: memref<1x64xf32, #tpu.memory_space<vmem>>, %arg4: memref<64x64xf32, #tpu.memory_space<vmem>>, %arg5: memref<1x64xf32, #tpu.memory_space<vmem>>, %arg6: memref<64x4xf32, #tpu.memory_space<vmem>>, %arg7: memref<2x4xf32, #tpu.memory_space<vmem>>) attributes {dimension_semantics = [#tpu.dimension_semantics<arbitrary>], iteration_bounds = array<i64: 1>, scalar_prefetch = 0 : i64, scratch_operands = 0 : i64, tpu.core_type = #tpu.core_type<tc>, window_params = [{pipeline_mode = #tpu.pipeline_mode<synchronous>, transform_indices = @transform_0, window_bounds = array<i64: 2, 512>}, {pipeline_mode = #tpu.pipeline_mode<synchronous>, transform_indices = @transform_1, window_bounds = array<i64: 512, 64>}, {pipeline_mode = #tpu.pipeline_mode<synchronous>, transform_indices = @transform_2, window_bounds = array<i64: 1, 64>}, {pipeline_mode = #tpu.pipeline_mode<synchronous>, transform_indices = @transform_3, window_bounds = array<i64: 64, 64>}, {pipeline_mode = #tpu.pipeline_mode<synchronous>, transform_indices = @transform_4, window_bounds = array<i64: 1, 64>}, {pipeline_mode = #tpu.pipeline_mode<synchronous>, transform_indices = @transform_5, window_bounds = array<i64: 64, 4>}, {pipeline_mode = #tpu.pipeline_mode<synchronous>, transform_indices = @transform_6, window_bounds = array<i64: 2, 4>}]} {
    %c0 = arith.constant 0 : index
    %c0_0 = arith.constant 0 : index
    %0 = vector.load %arg1[%c0, %c0_0] : memref<2x512xf32, #tpu.memory_space<vmem>>, vector<2x512xf32>
    %c0_1 = arith.constant 0 : index
    %c0_2 = arith.constant 0 : index
    %1 = vector.load %arg2[%c0_1, %c0_2] : memref<512x64xf32, #tpu.memory_space<vmem>>, vector<512x64xf32>
    %cst = arith.constant dense<0.000000e+00> : vector<2x64xf32>
    %2 = tpu.matmul %0, %1, %cst {dimension_numbers = #tpu.dot_dimension_numbers<[1], [0], [0], [1], [0, 0, 1, 1], [], []>} : vector<2x512xf32>, vector<512x64xf32>, vector<2x64xf32> -> vector<2x64xf32>
    %c0_3 = arith.constant 0 : index
    %c0_4 = arith.constant 0 : index
    %3 = vector.load %arg3[%c0_3, %c0_4] : memref<1x64xf32, #tpu.memory_space<vmem>>, vector<1x64xf32>
    %4 = vector.broadcast %3 : vector<1x64xf32> to vector<2x64xf32>
    %5 = arith.addf %2, %4 : vector<2x64xf32>
    %cst_5 = arith.constant 0.000000e+00 : f32
    %6 = vector.broadcast %cst_5 : f32 to vector<2x64xf32>
    %7 = arith.cmpf oge, %5, %6 : vector<2x64xf32>
    %cst_6 = arith.constant 2.000000e-01 : f32
    %8 = vector.broadcast %cst_6 : f32 to vector<2x64xf32>
    %9 = arith.mulf %8, %5 : vector<2x64xf32>
    %10 = arith.select %7, %5, %9 : vector<2x64xi1>, vector<2x64xf32>
    %c0_7 = arith.constant 0 : index
    %c0_8 = arith.constant 0 : index
    %11 = vector.load %arg4[%c0_7, %c0_8] : memref<64x64xf32, #tpu.memory_space<vmem>>, vector<64x64xf32>
    %cst_9 = arith.constant dense<0.000000e+00> : vector<2x64xf32>
    %12 = tpu.matmul %10, %11, %cst_9 {dimension_numbers = #tpu.dot_dimension_numbers<[1], [0], [0], [1], [0, 0, 1, 1], [], []>} : vector<2x64xf32>, vector<64x64xf32>, vector<2x64xf32> -> vector<2x64xf32>
    %c0_10 = arith.constant 0 : index
    %c0_11 = arith.constant 0 : index
    %13 = vector.load %arg5[%c0_10, %c0_11] : memref<1x64xf32, #tpu.memory_space<vmem>>, vector<1x64xf32>
    %14 = vector.broadcast %13 : vector<1x64xf32> to vector<2x64xf32>
    %15 = arith.addf %12, %14 : vector<2x64xf32>
    %cst_12 = arith.constant 0.000000e+00 : f32
    %16 = vector.broadcast %cst_12 : f32 to vector<2x64xf32>
    %17 = arith.cmpf oge, %15, %16 : vector<2x64xf32>
    %cst_13 = arith.constant 2.000000e-01 : f32
    %18 = vector.broadcast %cst_13 : f32 to vector<2x64xf32>
    %19 = arith.mulf %18, %15 : vector<2x64xf32>
    %20 = arith.select %17, %15, %19 : vector<2x64xi1>, vector<2x64xf32>
    %cst_14 = arith.constant dense<0.000000e+00> : vector<2xf32>
    %21 = vector.multi_reduction <add>, %20, %cst_14 [1] : vector<2x64xf32> to vector<2xf32>
    %22 = vector.shape_cast %21 : vector<2xf32> to vector<2x1xf32>
    %cst_15 = arith.constant 6.400000e+01 : f32
    %23 = vector.broadcast %cst_15 : f32 to vector<2x1xf32>
    %24 = arith.divf %22, %23 : vector<2x1xf32>
    %25 = vector.broadcast %24 : vector<2x1xf32> to vector<2x64xf32>
    %26 = arith.subf %20, %25 : vector<2x64xf32>
    %27 = arith.mulf %26, %26 : vector<2x64xf32>
    %cst_16 = arith.constant dense<0.000000e+00> : vector<2xf32>
    %28 = vector.multi_reduction <add>, %27, %cst_16 [1] : vector<2x64xf32> to vector<2xf32>
    %29 = vector.shape_cast %28 : vector<2xf32> to vector<2x1xf32>
    %cst_17 = arith.constant 6.400000e+01 : f32
    %30 = vector.broadcast %cst_17 : f32 to vector<2x1xf32>
    %31 = arith.divf %29, %30 : vector<2x1xf32>
    %cst_18 = arith.constant 9.99999974E-6 : f32
    %32 = vector.broadcast %cst_18 : f32 to vector<2x1xf32>
    %33 = arith.addf %31, %32 : vector<2x1xf32>
    %34 = math.rsqrt %33 : vector<2x1xf32>
    %35 = vector.broadcast %34 : vector<2x1xf32> to vector<2x64xf32>
    %36 = arith.mulf %26, %35 : vector<2x64xf32>
    %c0_19 = arith.constant 0 : index
    %c0_20 = arith.constant 0 : index
    %37 = vector.load %arg6[%c0_19, %c0_20] : memref<64x4xf32, #tpu.memory_space<vmem>>, vector<64x4xf32>
    %cst_21 = arith.constant dense<0.000000e+00> : vector<2x4xf32>
    %38 = tpu.matmul %36, %37, %cst_21 {dimension_numbers = #tpu.dot_dimension_numbers<[1], [0], [0], [1], [0, 0, 1, 1], [], []>} : vector<2x64xf32>, vector<64x4xf32>, vector<2x4xf32> -> vector<2x4xf32>
    %cst_22 = arith.constant dense<0xFF800000> : vector<2xf32>
    %39 = vector.multi_reduction <maximumf>, %38, %cst_22 [1] : vector<2x4xf32> to vector<2xf32>
    %40 = vector.shape_cast %39 : vector<2xf32> to vector<2x1xf32>
    %41 = vector.broadcast %40 : vector<2x1xf32> to vector<2x4xf32>
    %42 = arith.subf %38, %41 : vector<2x4xf32>
    %43 = math.exp %42 : vector<2x4xf32>
    %cst_23 = arith.constant dense<0.000000e+00> : vector<2xf32>
    %44 = vector.multi_reduction <add>, %43, %cst_23 [1] : vector<2x4xf32> to vector<2xf32>
    %45 = vector.shape_cast %44 : vector<2xf32> to vector<2x1xf32>
    %46 = vector.broadcast %45 : vector<2x1xf32> to vector<2x4xf32>
    %47 = arith.divf %43, %46 : vector<2x4xf32>
    %c0_24 = arith.constant 0 : index
    %c0_25 = arith.constant 0 : index
    %48 = vector.load %arg7[%c0_24, %c0_25] : memref<2x4xf32, #tpu.memory_space<vmem>>, vector<2x4xf32>
    tpu.vector_store %arg7[%c0_24, %c0_25], %47 {strides = array<i32>} : memref<2x4xf32, #tpu.memory_space<vmem>>, vector<2x4xf32>,
    return
  }
  func.func @transform_0(%arg0: i32) -> (i32, i32) {
    %c0_i32 = arith.constant 0 : i32
    %c0_i32_0 = arith.constant 0 : i32
    %c0_i32_1 = arith.constant 0 : i32
    return %c0_i32, %c0_i32_0 : i32, i32
  }
  func.func @transform_1(%arg0: i32) -> (i32, i32) {
    %c0_i32 = arith.constant 0 : i32
    %c0_i32_0 = arith.constant 0 : i32
    %c0_i32_1 = arith.constant 0 : i32
    return %c0_i32, %c0_i32_0 : i32, i32
  }
  func.func @transform_2(%arg0: i32) -> (i32, i32) {
    %c0_i32 = arith.constant 0 : i32
    %c0_i32_0 = arith.constant 0 : i32
    %c0_i32_1 = arith.constant 0 : i32
    return %c0_i32, %c0_i32_0 : i32, i32
  }
  func.func @transform_3(%arg0: i32) -> (i32, i32) {
    %c0_i32 = arith.constant 0 : i32
    %c0_i32_0 = arith.constant 0 : i32
    %c0_i32_1 = arith.constant 0 : i32
    return %c0_i32, %c0_i32_0 : i32, i32
  }
  func.func @transform_4(%arg0: i32) -> (i32, i32) {
    %c0_i32 = arith.constant 0 : i32
    %c0_i32_0 = arith.constant 0 : i32
    %c0_i32_1 = arith.constant 0 : i32
    return %c0_i32, %c0_i32_0 : i32, i32
  }
  func.func @transform_5(%arg0: i32) -> (i32, i32) {
    %c0_i32 = arith.constant 0 : i32
    %c0_i32_0 = arith.constant 0 : i32
    %c0_i32_1 = arith.constant 0 : i32
    return %c0_i32, %c0_i32_0 : i32, i32
  }
  func.func @transform_6(%arg0: i32) -> (i32, i32) {
    %c0_i32 = arith.constant 0 : i32
    %c0_i32_0 = arith.constant 0 : i32
    %c0_i32_1 = arith.constant 0 : i32
    return %c0_i32, %c0_i32_0 : i32, i32
  }
}

</mosaic_0001>

<bundles_post_ra>
// kernel: tpu_custom_call.1
= control target key start
LH: loop header
LB: loop body
LE: loop exit
PB: predicated region body
PF: predicated region fallthrough
CT: control target
= control target key end

     0   :  { %v730_v47 = vmov 1983009808   ;;  %v101_v49 = vlaneseq  ;;  %s1044_s0 = inlined_call_operand.vmem [shape: f32[2,512], index: 0, kind: input, shape index: {}]   ;;  %s1045_s1 = inlined_call_operand.vmem [shape: f32[512,64], index: 1, kind: input, shape index: {}]   ;;  %s1046_s2 = inlined_call_operand.vmem [shape: f32[1,64], index: 2, kind: input, shape index: {}]   ;;  %s1047_s3 = inlined_call_operand.vmem [shape: f32[64,64], index: 3, kind: input, shape index: {}]   ;;  %s1048_s4 = inlined_call_operand.vmem [shape: f32[1,64], index: 4, kind: input, shape index: {}]   ;;  %s1049_s5 = inlined_call_operand.vmem [shape: f32[64,4], index: 5, kind: input, shape index: {}]   ;;  %s1050_s6 = inlined_call_operand.hbm [shape: f32[2,4], index: 6, kind: output, shape index: {}]  }
   0x1   :  { %v41_v0 = vld [vmem:[%s1045_s1 + $0x80] sm:$0xff]  ;;  %v42_v1 = vld [vmem:[%s1045_s1 + $0x88] sm:$0xff]  ;;  %v43_v11 = vld [vmem:[%s1045_s1 + $0x90] sm:$0xff]  ;;  %v99_v48 = vunpack.c.l.s4 %v730_v47 }
   0x2   :  { %v25_v2 = vld [vmem:[%s1045_s1] sm:$0xff]  ;;  %v606_v3 = vpack.c.bf16 %v42_v1, %v41_v0  ;;  %v26_v4 = vld [vmem:[%s1045_s1 + $0x8] sm:$0xff]  ;;  %v44_v13 = vld [vmem:[%s1045_s1 + $0x98] sm:$0xff]  ;;  %v102_v0 = vshrl.u32 %v101_v49, 7 }
   0x3   :  { %v73_v5 = vld [vmem:[%s1045_s1 + $0x180] sm:$0xff]  ;;  %v74_v6 = vld [vmem:[%s1045_s1 + $0x188] sm:$0xff]  ;;  %v608_v7 = vpack.c.bf16 %v26_v4, %v25_v2  ;;  %v27_v14 = vld [vmem:[%s1045_s1 + $0x10] sm:$0xff]  ;;  %v610_v16 = vpack.c.bf16 %v44_v13, %v43_v11  ;;  %v100_v63 = vunpack.c.0.s8 %v99_v48 }
   0x4   :  { %v638_v8 = vpack.c.bf16 %v74_v6, %v73_v5  ;;  %v57_v9 = vld [vmem:[%s1045_s1 + $0x100] sm:$0xff]  ;;  %v58_v10 = vld [vmem:[%s1045_s1 + $0x108] sm:$0xff]  ;;  %607 = vmatprep.subr.bf16.mxu0 %v606_v3  ;;  %v28_v15 = vld [vmem:[%s1045_s1 + $0x18] sm:$0xff] }
   0x5   :  { %v640_v12 = vpack.c.bf16 %v58_v10, %v57_v9  ;;  %609 = vmatpush3.bf16.msra.mxu0 %v608_v7  ;;  %v612_v17 = vpack.c.bf16 %v28_v15, %v27_v14  ;;  %v75_v18 = vld [vmem:[%s1045_s1 + $0x190] sm:$0xff]  ;;  %v76_v19 = vld [vmem:[%s1045_s1 + $0x198] sm:$0xff]  ;;  %v45_v23 = vld [vmem:[%s1045_s1 + $0xa0] sm:$0xff]  ;;  %v103_v13 = vsub.s32 %v100_v63, %v102_v0 }
   0x6   :  { %639 = vmatprep.subr.bf16.mxu1 %v638_v8  ;;  %v59_v20 = vld [vmem:[%s1045_s1 + $0x110] sm:$0xff]  ;;  %v642_v21 = vpack.c.bf16 %v76_v19, %v75_v18  ;;  %v60_v22 = vld [vmem:[%s1045_s1 + $0x118] sm:$0xff]  ;;  %v46_v24 = vld [vmem:[%s1045_s1 + $0xa8] sm:$0xff]  ;;  %611 = vmatprep.subr.bf16.mxu0 %v610_v16 }
   0x7   :  { %641 = vmatpush3.bf16.msra.mxu1 %v640_v12  ;;  %v644_v25 = vpack.c.bf16 %v60_v22, %v59_v20  ;;  %v614_v26 = vpack.c.bf16 %v46_v24, %v45_v23  ;;  %v29_v27 = vld [vmem:[%s1045_s1 + $0x20] sm:$0xff]  ;;  %v30_v28 = vld [vmem:[%s1045_s1 + $0x28] sm:$0xff]  ;;  %v47_v35 = vld [vmem:[%s1045_s1 + $0xb0] sm:$0xff] }
   0x8   :  { %v77_v29 = vld [vmem:[%s1045_s1 + $0x1a0] sm:$0xff]  ;;  %643 = vmatprep.subr.bf16.mxu1 %v642_v21  ;;  %v78_v30 = vld [vmem:[%s1045_s1 + $0x1a8] sm:$0xff]  ;;  %v616_v33 = vpack.c.bf16 %v30_v28, %v29_v27  ;;  %v48_v36 = vld [vmem:[%s1045_s1 + $0xb8] sm:$0xff] }
   0x9   :  { %v61_v31 = vld [vmem:[%s1045_s1 + $0x120] sm:$0xff]  ;;  %v62_v32 = vld [vmem:[%s1045_s1 + $0x128] sm:$0xff]  ;;  %613 = vmatpush3.bf16.msra.mxu0 %v612_v17  ;;  %v646_v34 = vpack.c.bf16 %v78_v30, %v77_v29  ;;  %v31_v37 = vld [vmem:[%s1045_s1 + $0x30] sm:$0xff]  ;;  %v618_v39 = vpack.c.bf16 %v48_v36, %v47_v35 }
   0xa   :  { %615 = vmatprep.subr.bf16.mxu0 %v614_v26  ;;  %v648_v38 = vpack.c.bf16 %v62_v32, %v61_v31  ;;  %v32_v40 = vld [vmem:[%s1045_s1 + $0x38] sm:$0xff]  ;;  %v79_v41 = vld [vmem:[%s1045_s1 + $0x1b0] sm:$0xff]  ;;  %v49_v46 = vld [vmem:[%s1045_s1 + $0xc0] sm:$0xff] }
   0xb   :  { %645 = vmatpush3.bf16.msra.mxu1 %v644_v25  ;;  %v80_v42 = vld [vmem:[%s1045_s1 + $0x1b8] sm:$0xff]  ;;  %v63_v44 = vld [vmem:[%s1045_s1 + $0x130] sm:$0xff]  ;;  %v50_v50 = vld [vmem:[%s1045_s1 + $0xc8] sm:$0xff]  ;;  %v620_v51 = vpack.c.bf16 %v32_v40, %v31_v37 }
   0xc   :  { %647 = vmatprep.subr.bf16.mxu1 %v646_v34  ;;  %v650_v43 = vpack.c.bf16 %v80_v42, %v79_v41  ;;  %v64_v45 = vld [vmem:[%s1045_s1 + $0x138] sm:$0xff]  ;;  %v81_v52 = vld [vmem:[%s1045_s1 + $0x1c0] sm:$0xff]  ;;  %v82_v53 = vld [vmem:[%s1045_s1 + $0x1c8] sm:$0xff]  ;;  %v622_v55 = vpack.c.bf16 %v50_v50, %v49_v46 }
   0xd   :  { %617 = vmatpush3.bf16.msra.mxu0 %v616_v33  ;;  %v652_v54 = vpack.c.bf16 %v64_v45, %v63_v44  ;;  %v33_v56 = vld [vmem:[%s1045_s1 + $0x40] sm:$0xff]  ;;  %v34_v57 = vld [vmem:[%s1045_s1 + $0x48] sm:$0xff]  ;;  %v654_v59 = vpack.c.bf16 %v82_v53, %v81_v52  ;;  %v51_v61 = vld [vmem:[%s1045_s1 + $0xd0] sm:$0xff] }
   0xe   :  { %619 = vmatprep.subr.bf16.mxu0 %v618_v39  ;;  %v65_v58 = vld [vmem:[%s1045_s1 + $0x140] sm:$0xff]  ;;  %v66_v60 = vld [vmem:[%s1045_s1 + $0x148] sm:$0xff]  ;;  %v52_v62 = vld [vmem:[%s1045_s1 + $0xd8] sm:$0xff]  ;;  %v624_v3 = vpack.c.bf16 %v34_v57, %v33_v56 }
   0xf   :  { %649 = vmatpush3.bf16.msra.mxu1 %v648_v38  ;;  %v83_v1 = vld [vmem:[%s1045_s1 + $0x1d0] sm:$0xff]  ;;  %v84_v2 = vld [vmem:[%s1045_s1 + $0x1d8] sm:$0xff]  ;;  %v656_v4 = vpack.c.bf16 %v66_v60, %v65_v58  ;;  %v626_v5 = vpack.c.bf16 %v52_v62, %v51_v61  ;;  %v53_v11 = vld [vmem:[%s1045_s1 + $0xe0] sm:$0xff] }
  0x10   :  { %651 = vmatprep.subr.bf16.mxu1 %v650_v43  ;;  %v35_v6 = vld [vmem:[%s1045_s1 + $0x50] sm:$0xff]  ;;  %v36_v7 = vld [vmem:[%s1045_s1 + $0x58] sm:$0xff]  ;;  %v658_v9 = vpack.c.bf16 %v84_v2, %v83_v1  ;;  %v54_v12 = vld [vmem:[%s1045_s1 + $0xe8] sm:$0xff] }
  0x11   :  { %621 = vmatpush3.bf16.msra.mxu0 %v620_v51  ;;  %v67_v8 = vld [vmem:[%s1045_s1 + $0x150] sm:$0xff]  ;;  %v68_v10 = vld [vmem:[%s1045_s1 + $0x158] sm:$0xff]  ;;  %v85_v14 = vld [vmem:[%s1045_s1 + $0x1e0] sm:$0xff]  ;;  %v628_v16 = vpack.c.bf16 %v36_v7, %v35_v6  ;;  %v630_v20 = vpack.c.bf16 %v54_v12, %v53_v11 }
  0x12   :  { %623 = vmatprep.subr.bf16.mxu0 %v622_v55  ;;  %v86_v15 = vld [vmem:[%s1045_s1 + $0x1e8] sm:$0xff]  ;;  %v37_v17 = vld [vmem:[%s1045_s1 + $0x60] sm:$0xff]  ;;  %v660_v19 = vpack.c.bf16 %v68_v10, %v67_v8  ;;  %v55_v25 = vld [vmem:[%s1045_s1 + $0xf0] sm:$0xff] }
  0x13   :  { %653 = vmatpush3.bf16.msra.mxu1 %v652_v54  ;;  %v38_v18 = vld [vmem:[%s1045_s1 + $0x68] sm:$0xff]  ;;  %v69_v21 = vld [vmem:[%s1045_s1 + $0x160] sm:$0xff]  ;;  %v662_v24 = vpack.c.bf16 %v86_v15, %v85_v14  ;;  %v56_v26 = vld [vmem:[%s1045_s1 + $0xf8] sm:$0xff] }
  0x14   :  { %655 = vmatprep.subr.bf16.mxu1 %v654_v59  ;;  %v70_v22 = vld [vmem:[%s1045_s1 + $0x168] sm:$0xff]  ;;  %v24_v23 = vld [vmem:[%s1044_s0] sm:$0xff] }
  0x15   :  { %625 = vmatpush3.bf16.msra.mxu0 %v624_v3  ;;  %v104_v27 = vrot.slane %v24_v23, %v103_v13  ;;  %v97_v28 = vcombine.high %v24_v23, %v24_v23 }
  0x16   :  { %627 = vmatprep.subr.bf16.mxu0 %v626_v5 }
  0x17   :  { %657 = vmatpush3.bf16.msra.mxu1 %v656_v4 }
  0x18   :  { %659 = vmatprep.subr.bf16.mxu1 %v658_v9 }
  0x19   :  { %11 = vsyncpa [#allocation3], 0  ;;  %v87_v29 = vld [vmem:[%s1045_s1 + $0x1f0] sm:$0xff]  ;;  %v88_v30 = vld [vmem:[%s1045_s1 + $0x1f8] sm:$0xff]  ;;  %629 = vmatpush3.bf16.msra.mxu0 %v628_v16  ;;  %v632_v31 = vpack.c.bf16 %v38_v18, %v37_v17  ;;  %v112_v32 = vcombine.high %v104_v27, %v104_v27  ;;  %v111_v33 = vrot.slane %v97_v28, %v103_v13  ;;  %v664_v34 = vpack.c.bf16 %v70_v22, %v69_v21 }
  0x1a   :  { %631 = vmatprep.subr.bf16.mxu0 %v630_v20  ;;  %v634_v35 = vpack.c.bf16 %v56_v26, %v55_v25  ;;  %v39_v36 = vld [vmem:[%s1045_s1 + $0x70] sm:$0xff]  ;;  %v40_v37 = vld [vmem:[%s1045_s1 + $0x78] sm:$0xff]  ;;  %v666_v38 = vpack.c.bf16 %v88_v30, %v87_v29  ;;  %v261_v44 = vld [vmem:[%s1047_s3] sm:$0xff]  ;;  %v731_v47 = vmov 0.0|0.0   ;;  %vm732_vm0 = vmmov 0  }
  0x1b   :  { %661 = vmatpush3.bf16.msra.mxu1 %v660_v19  ;;  %v71_v39 = vld [vmem:[%s1045_s1 + $0x170] sm:$0xff]  ;;  %v72_v40 = vld [vmem:[%s1045_s1 + $0x178] sm:$0xff]  ;;  %182 = vmatprep.mubr.f32.mxu0 %v112_v32  ;;  %v113_v41 = vcombine.high %v111_v33, %v111_v33  ;;  %v636_v42 = vpack.c.bf16 %v40_v37, %v39_v36  ;;  %v262_v45 = vld [vmem:[%s1047_s3 + $0x8] sm:$0xff]  ;;  %v733_v57 = vmov 0.0   ;;  %vm276_vm2 = vcmask 523264  }
  0x1c   :  { %663 = vmatprep.subr.bf16.mxu1 %v662_v24  ;;  %v668_v43 = vpack.c.bf16 %v72_v40, %v71_v39  ;;  %v671_v46 = vpack.c.bf16 %v262_v45, %v261_v44  ;;  %v263_v48 = vld [vmem:[%s1047_s3 + $0x10] sm:$0xff]  ;;  %v264_v49 = vld [vmem:[%s1047_s3 + $0x18] sm:$0xff]  ;;  %v265_v51 = vld [vmem:[%s1047_s3 + $0x20] sm:$0xff]  ;;  %vm353_vm4 = vcmask 517120   ;;  %vm449_vm5 = vcmask 25600  }
  0x1d   :  { %633 = vmatpush3.bf16.msra.mxu0 %v632_v31  ;;  %252 = vmatprep.mubr.f32.mxu1 %v113_v41  ;;  %v674_v50 = vpack.c.bf16 %v264_v49, %v263_v48  ;;  %v266_v52 = vld [vmem:[%s1047_s3 + $0x28] sm:$0xff]  ;;  %v267_v54 = vld [vmem:[%s1047_s3 + $0x30] sm:$0xff]  ;;  %v268_v55 = vld [vmem:[%s1047_s3 + $0x38] sm:$0xff] }
  0x1e   :  { %635 = vmatprep.subr.bf16.mxu0 %v634_v35  ;;  %v677_v53 = vpack.c.bf16 %v266_v52, %v265_v51  ;;  %v680_v56 = vpack.c.bf16 %v268_v55, %v267_v54  ;;  %v476_v59 = vld [vmem:[%s1046_s2] ss:$0 sm:$0xff]  ;;  %v369_v18 = vld [vmem:[%s1049_s5 + $0x8] sm:$0xff]  ;;  %v370_v20 = vld [vmem:[%s1049_s5 + $0x10] sm:$0xff] }
  0x1f   :  { %665 = vmatpush3.bf16.msra.mxu1 %v664_v34  ;;  %v477_v5 = vld [vmem:[%s1048_s4] ss:$0 sm:$0xff]  ;;  %v371_v21 = vld [vmem:[%s1049_s5 + $0x18] sm:$0xff]  ;;  %v373_v24 = vld [vmem:[%s1049_s5 + $0x28] sm:$0xff] }
  0x20   :  { %667 = vmatprep.subr.bf16.mxu1 %v666_v38  ;;  %v368_v17 = vld [vmem:[%s1049_s5] sm:$0xff]  ;;  %v686_v22 = vpack.c.bf16 %v371_v21, %v370_v20  ;;  %v374_v26 = vld [vmem:[%s1049_s5 + $0x30] sm:$0xff] }
  0x21   :  { %637 = vmatpush3.bf16.msra.mxu0 %v636_v42  ;;  %v683_v19 = vpack.c.bf16 %v369_v18, %v368_v17  ;;  %v372_v23 = vld [vmem:[%s1049_s5 + $0x20] sm:$0xff] }
  0x22   :  { %670 = vmatprep.subr.bf16.mxu0 %v731_v47  ;;  %v689_v25 = vpack.c.bf16 %v373_v24, %v372_v23 }
  0x23   :  { %669 = vmatpush3.bf16.msra.mxu1 %v668_v43 }
  0x24   :  { %682 = vmatprep.subr.bf16.mxu1 %v731_v47  ;;  %183 = vmatmul.mubr.f32.vlgmr.msra.gmra.mrb[0].mxu0 %v104_v27  ;;  %v375_v27 = vld [vmem:[%s1049_s5 + $0x38] sm:$0xff]  ;;  %s734_s5 = smov [#allocation2]  }
  0x25   :  { %672 = vmatpush3.bf16.msra.mxu0 %v671_v46  ;;  %584 = vmatprep.mubr.msk.f32.mxu0 %vm732_vm0, %v733_v57  ;;  %v692_v28 = vpack.c.bf16 %v375_v27, %v374_v26  ;;  %s468_s12 = sshll.u32 %s734_s5, 4  ;;  %s469_s12 = int_to_ptr.vmem [resolvable:$true] %s468_s12 }
  0x26   :  { %253 = vmatmul.mubr.f32.vlgmr.msra.gmra.mrb[0].mxu1 %v111_v33  ;;  %673 = vmatprep.subr.bf16.mxu0 %v731_v47  ;;  %s706_s13 = scalar_lea.vmem %s469_s12, 32  ;;  %p711_p1 = scmp.lt.s32.totalorder %s469_s12, %s469_s12 }
  0x27   :  { %603 = vmatprep.mubr.msk.f32.mxu1 %vm732_vm0, %v733_v57  ;;  %684 = vmatpush3.bf16.msra.mxu1 %v683_v19  ;;  %p707_p0 = scmp.ne.s32.totalorder %s469_s12, %s706_s13  ;;  %p712_p2 = scmp.lt.s32.totalorder %s706_s13, %s706_s13 }
  0x28   :  { %685 = vmatprep.subr.bf16.mxu1 %v731_v47 }
  0x29   :  { %675 = vmatpush3.bf16.msra.mxu0 %v674_v50  ;;  %p713_p3 = por %p712_p2, %p711_p1 }
  0x2a   :  { %676 = vmatprep.subr.bf16.mxu0 %v731_v47 }
  0x2b   :  { %687 = vmatpush3.bf16.msra.mxu1 %v686_v22  ;;  %p714_p4 = pnand %p713_p3, %p707_p0 }
  0x2c   :  { %688 = vmatprep.subr.bf16.mxu1 %v731_v47 }
  0x2d   :  { %678 = vmatpush3.bf16.msra.mxu0 %v677_v53 }
  0x2e   :  { %679 = vmatprep.subr.bf16.mxu0 %v731_v47 }
  0x2f   :  { %690 = vmatpush3.bf16.msra.mxu1 %v689_v25 }
  0x30   :  { %691 = vmatprep.subr.bf16.mxu1 %v731_v47 }
  0x31   :  { %681 = vmatpush3.bf16.msra.mxu0 %v680_v56 }
  0x33   :  { %693 = vmatpush3.bf16.msra.mxu1 %v692_v28 }
  0xf7   :  { %v512_v58 = vpop.f32.mrb[0].mxu0 }
  0xf8   :  { %v513_v60 = vpop.f32.mrb[1].mxu0 }
  0xf9   :  { %v547_v61 = vpop.f32.mrb[0].mxu1  ;;  %v514_v62 = vadd.f32 %v513_v60, %v512_v58 }
  0xfa   :  { %v548_v63 = vpop.f32.mrb[1].mxu1 }
  0xfb   :  { %v549_v0 = vadd.f32 %v548_v63, %v547_v61  ;;  %v185_v1 = vadd.f32 %v514_v62, %v476_v59 }
  0xfd   :  { %v255_v2 = vadd.f32 %v549_v0, %v185_v1 }
  0xff   :  { %vm258_vm1 = vcmp.ge.f32.partialorder %v255_v2, 0.0  ;;  %v259_v3 = vmul.f32 0.2, %v255_v2 }
 0x101   :  { %v260_v4 = vsel %vm258_vm1, %v255_v2, %v259_v3 }
 0x102   :  { %585 = vmatmul.mubr.msk.f32.vlgmr.msra.gmra.mrb[2].mxu0 %vm276_vm2, %v260_v4 }
 0x1d5   :  { %v346_v6 = vpop.f32.mrb[2].mxu0 }
 0x1d6   :  { %v347_v7 = vadd.f32 %v477_v5, %v346_v6  ;;  %v586_v8 = vpop.f32.mrb[3].mxu0 }
 0x1d8   :  { %v351_v9 = vmul.f32 0.2, %v347_v7  ;;  %vm350_vm3 = vcmp.ge.f32.partialorder %v347_v7, 0.0 }
 0x1da   :  { %v352_v10 = vsel %vm350_vm3, %v347_v7, %v351_v9 }
 0x1db   :  { %v354_v11 = vsel %vm353_vm4, %v352_v10, 0.0 }
 0x1dc   :  { %355 = vadd.xlane.f32.xlu0 %v354_v11 }
 0x269   :  { %v356_v12 = vpop.xlane.xlu0 %355 }
 0x26a   :  { %v358_v13 = vmul.f32 0.015625, %v356_v12 }
 0x26c   :  { %v359_v14 = vsub.f32 %v352_v10, %v358_v13 }
 0x26e   :  { %v360_v15 = vmul.f32 %v359_v14, %v359_v14 }
 0x270   :  { %v361_v16 = vsel %vm353_vm4, %v360_v15, 0.0 }
 0x271   :  { %362 = vadd.xlane.f32.xlu0 %v361_v16 }
 0x2fe   :  { %v363_v29 = vpop.xlane.xlu0 %362 }
 0x2ff   :  { %v364_v30 = vmul.f32 0.015625, %v363_v29 }
 0x301   :  { %v365_v31 = vadd.f32 1e-05, %v364_v30 }
 0x303   :  { %700 = vrsqrt.f32 %v365_v31 }
 0x30d   :  { %v701_v32 = vpop.eup %700 }
 0x30e   :  { %v367_v33 = vmul.f32 %v701_v32, %v359_v14 }
 0x310   :  { %604 = vmatmul.mubr.msk.f32.vlgmr.msra.gmra.mrb[2].mxu1 %vm276_vm2, %v367_v33 }
 0x3e3   :  { %v445_v34 = vpop.f32.mrb[2].mxu1 }
 0x3e4   :  { %v605_v35 = vpop.f32.mrb[3].mxu1  ;;  %v450_v36 = vsel %vm449_vm5, %v445_v34, -inf }
 0x3e5   :  { %451 = vmax.xlane.f32.xlu1 %v450_v36 }
 0x472   :  { %v452_v37 = vpop.xlane.xlu1 %451 }
 0x473   :  { %v453_v38 = vsub.f32 %v445_v34, %v452_v37 }
 0x475   :  { %v454_v39 = vmul.f32 1.442695, %v453_v38 }
 0x477   :  { %702 = vpow2.f32 %v454_v39 }
 0x481   :  { %v703_v40 = vpop.eup %702 }
 0x482   :  { %v456_v41 = vsel %vm449_vm5, %v703_v40, 0.0 }
 0x483   :  { %457 = vadd.xlane.f32.xlu1 %v456_v41 }
 0x510   :  { %v458_v42 = vpop.xlane.xlu1 %457 }
 0x511   :  { %704 = vrcp.f32 %v458_v42 }
 0x51b   :  { %v705_v43 = vpop.eup %704 }
 0x51c   :  { %v460_v44 = vmul.f32 %v705_v43, %v703_v40 }
 0x51e   :  { %461 = vst.msk [vmem:[#allocation2] sm:$0x3] %vm449_vm5, %v460_v44 }
 0x51f   :  { %717 = shalt.err (!%p714_p4)
}
 0x520   :  { %s718_s16 = scalar_lea.hbm %s1050_s6, 32 }
 0x521   :  { %p719_p5 = scmp.ne.s32.totalorder %s1050_s6, %s718_s16  ;;  %p722_p6 = scmp.lt.u32.totalorder %s718_s16, %s1050_s6 }
 0x523   :  { %p724_p7 = pnand %p722_p6, %p719_p5 }
 0x525   :  { %727 = shalt.err (!%p724_p7)
}
 0x526   :  { %471 = dma.vmem_to_hbm [thread:$0]  %s469_s12, 32, %s1050_s6, [#allocation3]  }
 0x527   :  { %728 = dma.done.wait [#allocation3], 32  }
 0x528   :  { %729 = vsyncadd [#allocation3], 4294967264 }
 0x529   :  { %475 = vsyncpa [#allocation3], 1 }

</bundles_post_ra>
